<compile_context>
chip_gen: v7x
topology: tpu7x:2x2x1
jax: 0.10.0
libtpu: 0.0.40
codegen_flags: <defaults>
</compile_context>

<pallas_src>
import jax
import jax.numpy as jnp
from jax.experimental import pallas as pl
from jax.experimental.pallas import tpu as pltpu

P_DROP = 0.2
LANE = 128
IN_FEATURES = 30


def _round_up(n, m):
    return ((n + m - 1) // m) * m


def mlp_kernel(x_ref, mask_ref, w1_ref, b1_ref, w2_ref, b2_ref, w3_ref, b3_ref,
               o_ref):
    h_pad = w1_ref.shape[1]          # static padded hidden width (multiple of 128)
    x = x_ref[...]

    # fc1 + ReLU + dropout (mask already holds 0 or 1/(1-p))
    h = jnp.dot(x, w1_ref[...], preferred_element_type=jnp.float32) + b1_ref[...]
    h = jnp.maximum(h, 0.0)
    h = h * mask_ref[:, :h_pad]

    # fc2 + ReLU + dropout
    h = jnp.dot(h, w2_ref[...], preferred_element_type=jnp.float32) + b2_ref[...]
    h = jnp.maximum(h, 0.0)
    h = h * mask_ref[:, h_pad:]

    # fc3 (N = 1): VPU multiply + lane reduction, no MXU round-trip
    logit = jnp.sum(h * w3_ref[...], axis=-1, keepdims=True) + b3_ref[...]

    # sigmoid
    o_ref[...] = 1.0 / (1.0 + jnp.exp(-logit))


def net_forward(x, params, key, *, training=True, tile_b=256):
    """x: [batch, 30] float32 -> [batch, 1] float32 (Net.forward, ReLU activation)."""
    w1, b1, w2, b2, w3, b3 = params          # padded kernel layout (see init_params)
    batch, in_features = x.shape
    k_pad, h_pad = w1.shape

    # zero-pad features to the 128-lane boundary (numerically exact)
    x_p = jnp.pad(x, ((0, 0), (0, k_pad - in_features)))

    # inverted-dropout masks for both dropout layers in one lane-dense buffer
    if training:
        keep = jax.random.uniform(key, (batch, 2 * h_pad), jnp.float32) >= P_DROP
        mask = keep.astype(jnp.float32) * (1.0 / (1.0 - P_DROP))
    else:
        mask = jnp.ones((batch, 2 * h_pad), jnp.float32)

    tb = min(tile_b, _round_up(batch, 8))
    grid = (pl.cdiv(batch, tb),)
    resident = lambda i: (0, 0)              # weights/biases stay VMEM-resident

    return pl.pallas_call(
        mlp_kernel,
        out_shape=jax.ShapeDtypeStruct((batch, 1), jnp.float32),
        grid=grid,
        in_specs=[
            pl.BlockSpec((tb, k_pad), lambda i: (i, 0)),        # x (streamed)
            pl.BlockSpec((tb, 2 * h_pad), lambda i: (i, 0)),    # dropout masks
            pl.BlockSpec((k_pad, h_pad), resident),             # w1
            pl.BlockSpec((1, h_pad), resident),                 # b1
            pl.BlockSpec((h_pad, h_pad), resident),             # w2
            pl.BlockSpec((1, h_pad), resident),                 # b2
            pl.BlockSpec((1, h_pad), resident),                 # w3 (row vector)
            pl.BlockSpec((1, 1), resident),                     # b3
        ],
        out_specs=pl.BlockSpec((tb, 1), lambda i: (i, 0)),
        compiler_params=pltpu.CompilerParams(
            dimension_semantics=("parallel",),   # megacore: shard batch tiles
        ),
    )(x_p, mask, w1, b1, w2, b2, w3, b3)


def init_params(key, in_features=IN_FEATURES, neurons=32):
    """PyTorch-style Linear init (U(-1/sqrt(fan_in), 1/sqrt(fan_in))), returned
    zero-padded to lane-aligned [in, out] kernel layout."""
    def linear(k, fan_in, fan_out):
        kw, kb = jax.random.split(k)
        bound = 1.0 / jnp.sqrt(float(fan_in))
        w = jax.random.uniform(kw, (fan_in, fan_out), jnp.float32, -bound, bound)
        b = jax.random.uniform(kb, (1, fan_out), jnp.float32, -bound, bound)
        return w, b

    k1, k2, k3 = jax.random.split(key, 3)
    w1, b1 = linear(k1, in_features, neurons)
    w2, b2 = linear(k2, neurons, neurons)
    w3, b3 = linear(k3, neurons, 1)

    k_pad = _round_up(in_features, LANE)
    h_pad = _round_up(neurons, LANE)
    w1p = jnp.zeros((k_pad, h_pad), jnp.float32).at[:in_features, :neurons].set(w1)
    b1p = jnp.zeros((1, h_pad), jnp.float32).at[:, :neurons].set(b1)
    w2p = jnp.zeros((h_pad, h_pad), jnp.float32).at[:neurons, :neurons].set(w2)
    b2p = jnp.zeros((1, h_pad), jnp.float32).at[:, :neurons].set(b2)
    w3p = jnp.zeros((1, h_pad), jnp.float32).at[:, :neurons].set(w3.T)
    return (w1p, b1p, w2p, b2p, w3p, b3)


if __name__ == "__main__":
    key = jax.random.PRNGKey(0)
    k_x, k_p, k_d = jax.random.split(key, 3)

    batch, in_features, neurons = 8, 30, 32
    x = jax.random.normal(k_x, (batch, in_features), dtype=jnp.float32)
    params = init_params(k_p, in_features, neurons)

    # training-mode forward (matches torch F.dropout default training=True)
    out = jax.jit(net_forward)(x, params, k_d)
    out = jax.block_until_ready(out)
    assert out.shape == (batch, 1) and out.dtype == jnp.float32
    assert bool(jnp.all((out > 0.0) & (out < 1.0)))

    # eval-mode (no dropout) path checked against a pure-JAX reference
    out_eval = jax.jit(lambda a, p, k: net_forward(a, p, k, training=False))(
        x, params, k_d)
    out_eval = jax.block_until_ready(out_eval)
    w1p, b1p, w2p, b2p, w3p, b3p = params
    x_p = jnp.pad(x, ((0, 0), (0, w1p.shape[0] - in_features)))
    h = jnp.maximum(x_p @ w1p + b1p, 0.0)
    h = jnp.maximum(h @ w2p + b2p, 0.0)
    ref = 1.0 / (1.0 + jnp.exp(-(jnp.sum(h * w3p, axis=-1, keepdims=True) + b3p)))
    assert bool(jnp.allclose(out_eval, ref, rtol=1e-5, atol=1e-5))

    print("KERNEL_OK")
</pallas_src>

<mosaic_0001>
module attributes {stable_mosaic.version = 11 : i64} {
  func.func @mlp_kernel(%arg0: i32, %arg1: memref<8x128xf32, #tpu.memory_space<vmem>>, %arg2: memref<8x256xf32, #tpu.memory_space<vmem>>, %arg3: memref<128x128xf32, #tpu.memory_space<vmem>>, %arg4: memref<1x128xf32, #tpu.memory_space<vmem>>, %arg5: memref<128x128xf32, #tpu.memory_space<vmem>>, %arg6: memref<1x128xf32, #tpu.memory_space<vmem>>, %arg7: memref<1x128xf32, #tpu.memory_space<vmem>>, %arg8: memref<1x1xf32, #tpu.memory_space<vmem>>, %arg9: memref<8x1xf32, #tpu.memory_space<vmem>>) attributes {dimension_semantics = [#tpu.dimension_semantics<parallel>], iteration_bounds = array<i64: 1>, scalar_prefetch = 0 : i64, scratch_operands = 0 : i64, tpu.core_type = #tpu.core_type<tc>, window_params = [{transform_indices = @transform_0, window_bounds = array<i64: 8, 128>}, {transform_indices = @transform_1, window_bounds = array<i64: 8, 256>}, {pipeline_mode = #tpu.pipeline_mode<synchronous>, transform_indices = @transform_2, window_bounds = array<i64: 128, 128>}, {pipeline_mode = #tpu.pipeline_mode<synchronous>, transform_indices = @transform_3, window_bounds = array<i64: 1, 128>}, {pipeline_mode = #tpu.pipeline_mode<synchronous>, transform_indices = @transform_4, window_bounds = array<i64: 128, 128>}, {pipeline_mode = #tpu.pipeline_mode<synchronous>, transform_indices = @transform_5, window_bounds = array<i64: 1, 128>}, {pipeline_mode = #tpu.pipeline_mode<synchronous>, transform_indices = @transform_6, window_bounds = array<i64: 1, 128>}, {pipeline_mode = #tpu.pipeline_mode<synchronous>, transform_indices = @transform_7, window_bounds = array<i64: 1, 1>}, {transform_indices = @transform_8, window_bounds = array<i64: 8, 1>}]} {
    %c0 = arith.constant 0 : index
    %c0_0 = arith.constant 0 : index
    %0 = vector.load %arg1[%c0, %c0_0] : memref<8x128xf32, #tpu.memory_space<vmem>>, vector<8x128xf32>
    %c0_1 = arith.constant 0 : index
    %c0_2 = arith.constant 0 : index
    %1 = vector.load %arg3[%c0_1, %c0_2] : memref<128x128xf32, #tpu.memory_space<vmem>>, vector<128x128xf32>
    %cst = arith.constant dense<0.000000e+00> : vector<8x128xf32>
    %2 = tpu.matmul %0, %1, %cst {dimension_numbers = #tpu.dot_dimension_numbers<[1], [0], [0], [1], [0, 0, 1, 1], [], []>} : vector<8x128xf32>, vector<128x128xf32>, vector<8x128xf32> -> vector<8x128xf32>
    %c0_3 = arith.constant 0 : index
    %c0_4 = arith.constant 0 : index
    %3 = vector.load %arg4[%c0_3, %c0_4] : memref<1x128xf32, #tpu.memory_space<vmem>>, vector<1x128xf32>
    %4 = vector.broadcast %3 : vector<1x128xf32> to vector<8x128xf32>
    %5 = arith.addf %2, %4 : vector<8x128xf32>
    %cst_5 = arith.constant 0.000000e+00 : f32
    %6 = vector.broadcast %cst_5 : f32 to vector<8x128xf32>
    %7 = arith.maximumf %5, %6 : vector<8x128xf32>
    %c0_6 = arith.constant 0 : index
    %c0_7 = arith.constant 0 : index
    %8 = vector.load %arg2[%c0_6, %c0_7] : memref<8x256xf32, #tpu.memory_space<vmem>>, vector<8x128xf32>
    %9 = arith.mulf %7, %8 : vector<8x128xf32>
    %c0_8 = arith.constant 0 : index
    %c0_9 = arith.constant 0 : index
    %10 = vector.load %arg5[%c0_8, %c0_9] : memref<128x128xf32, #tpu.memory_space<vmem>>, vector<128x128xf32>
    %cst_10 = arith.constant dense<0.000000e+00> : vector<8x128xf32>
    %11 = tpu.matmul %9, %10, %cst_10 {dimension_numbers = #tpu.dot_dimension_numbers<[1], [0], [0], [1], [0, 0, 1, 1], [], []>} : vector<8x128xf32>, vector<128x128xf32>, vector<8x128xf32> -> vector<8x128xf32>
    %c0_11 = arith.constant 0 : index
    %c0_12 = arith.constant 0 : index
    %12 = vector.load %arg6[%c0_11, %c0_12] : memref<1x128xf32, #tpu.memory_space<vmem>>, vector<1x128xf32>
    %13 = vector.broadcast %12 : vector<1x128xf32> to vector<8x128xf32>
    %14 = arith.addf %11, %13 : vector<8x128xf32>
    %cst_13 = arith.constant 0.000000e+00 : f32
    %15 = vector.broadcast %cst_13 : f32 to vector<8x128xf32>
    %16 = arith.maximumf %14, %15 : vector<8x128xf32>
    %c0_14 = arith.constant 0 : index
    %c128 = arith.constant 128 : index
    %17 = vector.load %arg2[%c0_14, %c128] : memref<8x256xf32, #tpu.memory_space<vmem>>, vector<8x128xf32>
    %18 = arith.mulf %16, %17 : vector<8x128xf32>
    %c0_15 = arith.constant 0 : index
    %c0_16 = arith.constant 0 : index
    %19 = vector.load %arg7[%c0_15, %c0_16] : memref<1x128xf32, #tpu.memory_space<vmem>>, vector<1x128xf32>
    %20 = vector.broadcast %19 : vector<1x128xf32> to vector<8x128xf32>
    %21 = arith.mulf %18, %20 : vector<8x128xf32>
    %cst_17 = arith.constant dense<0.000000e+00> : vector<8xf32>
    %22 = vector.multi_reduction <add>, %21, %cst_17 [1] : vector<8x128xf32> to vector<8xf32>
    %23 = vector.shape_cast %22 : vector<8xf32> to vector<8x1xf32>
    %c0_18 = arith.constant 0 : index
    %c0_19 = arith.constant 0 : index
    %24 = vector.load %arg8[%c0_18, %c0_19] : memref<1x1xf32, #tpu.memory_space<vmem>>, vector<1x1xf32>
    %25 = vector.broadcast %24 : vector<1x1xf32> to vector<8x1xf32>
    %26 = arith.addf %23, %25 : vector<8x1xf32>
    %cst_20 = arith.constant 0.000000e+00 : f32
    %27 = vector.broadcast %cst_20 : f32 to vector<8x1xf32>
    %28 = arith.subf %27, %26 : vector<8x1xf32>
    %29 = math.exp %28 : vector<8x1xf32>
    %cst_21 = arith.constant 1.000000e+00 : f32
    %30 = vector.broadcast %cst_21 : f32 to vector<8x1xf32>
    %31 = arith.addf %30, %29 : vector<8x1xf32>
    %cst_22 = arith.constant 1.000000e+00 : f32
    %32 = vector.broadcast %cst_22 : f32 to vector<8x1xf32>
    %33 = arith.divf %32, %31 : vector<8x1xf32>
    %c0_23 = arith.constant 0 : index
    %c0_24 = arith.constant 0 : index
    %34 = vector.load %arg9[%c0_23, %c0_24] : memref<8x1xf32, #tpu.memory_space<vmem>>, vector<8x1xf32>
    tpu.vector_store %arg9[%c0_23, %c0_24], %33 {strides = array<i32>} : memref<8x1xf32, #tpu.memory_space<vmem>>, vector<8x1xf32>,
    return
  }
  func.func @transform_0(%arg0: i32) -> (i32, i32) {
    %c0_i32 = arith.constant 0 : i32
    %c0_i32_0 = arith.constant 0 : i32
    return %arg0, %c0_i32 : i32, i32
  }
  func.func @transform_1(%arg0: i32) -> (i32, i32) {
    %c0_i32 = arith.constant 0 : i32
    %c0_i32_0 = arith.constant 0 : i32
    return %arg0, %c0_i32 : i32, i32
  }
  func.func @transform_2(%arg0: i32) -> (i32, i32) {
    %c0_i32 = arith.constant 0 : i32
    %c0_i32_0 = arith.constant 0 : i32
    %c0_i32_1 = arith.constant 0 : i32
    return %c0_i32, %c0_i32_0 : i32, i32
  }
  func.func @transform_3(%arg0: i32) -> (i32, i32) {
    %c0_i32 = arith.constant 0 : i32
    %c0_i32_0 = arith.constant 0 : i32
    %c0_i32_1 = arith.constant 0 : i32
    return %c0_i32, %c0_i32_0 : i32, i32
  }
  func.func @transform_4(%arg0: i32) -> (i32, i32) {
    %c0_i32 = arith.constant 0 : i32
    %c0_i32_0 = arith.constant 0 : i32
    %c0_i32_1 = arith.constant 0 : i32
    return %c0_i32, %c0_i32_0 : i32, i32
  }
  func.func @transform_5(%arg0: i32) -> (i32, i32) {
    %c0_i32 = arith.constant 0 : i32
    %c0_i32_0 = arith.constant 0 : i32
    %c0_i32_1 = arith.constant 0 : i32
    return %c0_i32, %c0_i32_0 : i32, i32
  }
  func.func @transform_6(%arg0: i32) -> (i32, i32) {
    %c0_i32 = arith.constant 0 : i32
    %c0_i32_0 = arith.constant 0 : i32
    %c0_i32_1 = arith.constant 0 : i32
    return %c0_i32, %c0_i32_0 : i32, i32
  }
  func.func @transform_7(%arg0: i32) -> (i32, i32) {
    %c0_i32 = arith.constant 0 : i32
    %c0_i32_0 = arith.constant 0 : i32
    %c0_i32_1 = arith.constant 0 : i32
    return %c0_i32, %c0_i32_0 : i32, i32
  }
  func.func @transform_8(%arg0: i32) -> (i32, i32) {
    %c0_i32 = arith.constant 0 : i32
    %c0_i32_0 = arith.constant 0 : i32
    return %arg0, %c0_i32 : i32, i32
  }
}

</mosaic_0001>

<bundles_post_ra>
// kernel: net_forward.1
= control target key start
LH: loop header
LB: loop body
LE: loop exit
PB: predicated region body
PF: predicated region fallthrough
CT: control target
= control target key end

     0   :  { %s615_s0 = inlined_call_operand.vmem [shape: f32[8,128], index: 0, kind: input, shape index: {}]   ;;  %s616_s1 = inlined_call_operand.vmem [shape: f32[8,256], index: 1, kind: input, shape index: {}]   ;;  %s617_s2 = inlined_call_operand.hbm [shape: f32[128,128], index: 2, kind: input, shape index: {}]   ;;  %s618_s3 = inlined_call_operand.vmem [shape: f32[1,128], index: 3, kind: input, shape index: {}]   ;;  %s619_s4 = inlined_call_operand.hbm [shape: f32[128,128], index: 4, kind: input, shape index: {}]   ;;  %s620_s5 = inlined_call_operand.vmem [shape: f32[1,128], index: 5, kind: input, shape index: {}]   ;;  %s621_s6 = inlined_call_operand.vmem [shape: f32[1,128], index: 6, kind: input, shape index: {}]   ;;  %s622_s7 = inlined_call_operand.<no memory space> [shape: f32[1,1], index: 7, kind: input, shape index: {}]   ;;  %s623_s8 = inlined_call_operand.vmem [shape: f32[8,1], index: 8, kind: output, shape index: {}]  }
   0x1   :  { %v13_v0 = vstv %s622_s7 }
   0x2   :  { %14 = vst [vmem:[#allocation2] sm:$0x1] %v13_v0 }
   0x3   :  { %15 = vsyncpa [#allocation4], 0 }
   0x4   :  { %16 = vsyncpa [#allocation6], 0  ;;  %s499_s29 = smov [#allocation3]   ;;  %s451_s11 = scalar_lea.hbm %s617_s2, 2048 }
   0x5   :  { %s26_s30 = sshll.u32 %s499_s29, 4  ;;  %p452_p0 = scmp.ne.s32.totalorder %s617_s2, %s451_s11  ;;  %s27_s30 = int_to_ptr.vmem [resolvable:$true] %s26_s30 }
   0x6   :  { %p455_p1 = scmp.lt.u32.totalorder %s451_s11, %s617_s2 }
   0x8   :  { %p457_p2 = pnand %p455_p1, %p452_p0 }
   0xa   :  { %460 = shalt.err (!%p457_p2)
}
   0xb   :  { %s461_s7 = scalar_lea.vmem %s27_s30, 2048  ;;  %p466_p4 = scmp.lt.s32.totalorder %s27_s30, %s27_s30 }
   0xc   :  { %p462_p3 = scmp.ne.s32.totalorder %s27_s30, %s461_s7  ;;  %p467_p5 = scmp.lt.s32.totalorder %s461_s7, %s461_s7 }
   0xe   :  { %p468_p6 = por %p467_p5, %p466_p4 }
  0x10   :  { %p469_p7 = pnand %p468_p6, %p462_p3 }
  0x12   :  { %472 = shalt.err (!%p469_p7)
}
  0x13   :  { %s500_s16 = smov 128   ;;  %s501_s17 = smov 8  }
  0x14   :  { %32 = dma.hbm_to_vmem [thread:$0]  %s617_s2, 2048, %s27_s30, [#allocation4], %s500_s16, %s500_s16, %s501_s17  }
  0x15   :  { %s502_s20 = smov [#allocation5]   ;;  %s473_s24 = scalar_lea.hbm %s619_s4, 2048 }
  0x16   :  { %s40_s21 = sshll.u32 %s502_s20, 4  ;;  %p474_p8 = scmp.ne.s32.totalorder %s619_s4, %s473_s24  ;;  %s41_s21 = int_to_ptr.vmem [resolvable:$true] %s40_s21 }
  0x17   :  { %p477_p9 = scmp.lt.u32.totalorder %s473_s24, %s619_s4 }
  0x19   :  { %p479_p10 = pnand %p477_p9, %p474_p8 }
  0x1b   :  { %482 = shalt.err (!%p479_p10)
}
  0x1c   :  { %s483_s29 = scalar_lea.vmem %s41_s21, 2048  ;;  %p488_p12 = scmp.lt.s32.totalorder %s41_s21, %s41_s21 }
  0x1d   :  { %p484_p11 = scmp.ne.s32.totalorder %s41_s21, %s483_s29  ;;  %p489_p13 = scmp.lt.s32.totalorder %s483_s29, %s483_s29 }
  0x1f   :  { %p490_p0 = por %p489_p13, %p488_p12 }
  0x21   :  { %p491_p1 = pnand %p490_p0, %p484_p11 }
  0x23   :  { %494 = shalt.err (!%p491_p1)
}
  0x24   :  { %46 = dma.hbm_to_vmem [thread:$0]  %s619_s4, 2048, %s41_s21, [#allocation6], %s500_s16, %s500_s16, %s501_s17  }
  0x25   :  { %495 = dma.done.wait [#allocation4], 2048  }
  0x26   :  { %496 = vsyncadd [#allocation4], 4294965248 }
  0x27   :  { %497 = dma.done.wait [#allocation6], 2048  }
  0x28   :  { %498 = vsyncadd [#allocation6], 4294965248  ;;  %v503_v1 = vmov 0.0|0.0   ;;  %vm504_vm0 = vmmov 0   ;;  %v505_v2 = vmov 0.0   ;;  %v60_v3 = vld [vmem:[#allocation3] sm:$0xff] }
  0x29   :  { %392 = vmatprep.subr.bf16.mxu0 %v503_v1  ;;  %354 = vmatprep.mubr.msk.f32.mxu0 %vm504_vm0, %v505_v2  ;;  %v61_v4 = vld [vmem:[#allocation3 + $0x8] sm:$0xff]  ;;  %v62_v5 = vld [vmem:[#allocation3 + $0x10] sm:$0xff]  ;;  %v63_v7 = vld [vmem:[#allocation3 + $0x18] sm:$0xff]  ;;  %vm276_vm1 = vcmask 7168  }
  0x2a   :  { %416 = vmatprep.subr.bf16.mxu1 %v503_v1  ;;  %389 = vmatprep.mubr.msk.f32.mxu1 %vm504_vm0, %v505_v2  ;;  %v393_v6 = vpack.c.bf16 %v61_v4, %v60_v3  ;;  %v396_v8 = vpack.c.bf16 %v63_v7, %v62_v5  ;;  %v64_v9 = vld [vmem:[#allocation3 + $0x20] sm:$0xff]  ;;  %v65_v10 = vld [vmem:[#allocation3 + $0x28] sm:$0xff]  ;;  %v158_v13 = vld [vmem:[#allocation5 + $0x10] sm:$0xff] }
  0x2b   :  { %v156_v11 = vld [vmem:[#allocation5] sm:$0xff]  ;;  %v157_v12 = vld [vmem:[#allocation5 + $0x8] sm:$0xff]  ;;  %v159_v14 = vld [vmem:[#allocation5 + $0x18] sm:$0xff]  ;;  %v399_v15 = vpack.c.bf16 %v65_v10, %v64_v9 }
  0x2c   :  { %394 = vmatpush3.bf16.msra.mxu0 %v393_v6  ;;  %v417_v16 = vpack.c.bf16 %v157_v12, %v156_v11  ;;  %v66_v17 = vld [vmem:[#allocation3 + $0x30] sm:$0xff]  ;;  %v67_v18 = vld [vmem:[#allocation3 + $0x38] sm:$0xff]  ;;  %v420_v19 = vpack.c.bf16 %v159_v14, %v158_v13  ;;  %v160_v20 = vld [vmem:[#allocation5 + $0x20] sm:$0xff] }
  0x2d   :  { %395 = vmatprep.subr.bf16.mxu0 %v503_v1  ;;  %v161_v21 = vld [vmem:[#allocation5 + $0x28] sm:$0xff]  ;;  %v402_v22 = vpack.c.bf16 %v67_v18, %v66_v17  ;;  %v68_v23 = vld [vmem:[#allocation3 + $0x40] sm:$0xff]  ;;  %v162_v26 = vld [vmem:[#allocation5 + $0x30] sm:$0xff] }
  0x2e   :  { %418 = vmatpush3.bf16.msra.mxu1 %v417_v16  ;;  %v69_v24 = vld [vmem:[#allocation3 + $0x48] sm:$0xff]  ;;  %v423_v25 = vpack.c.bf16 %v161_v21, %v160_v20  ;;  %v163_v27 = vld [vmem:[#allocation5 + $0x38] sm:$0xff]  ;;  %v70_v29 = vld [vmem:[#allocation3 + $0x50] sm:$0xff] }
  0x2f   :  { %419 = vmatprep.subr.bf16.mxu1 %v503_v1  ;;  %v405_v28 = vpack.c.bf16 %v69_v24, %v68_v23  ;;  %v71_v30 = vld [vmem:[#allocation3 + $0x58] sm:$0xff]  ;;  %v426_v31 = vpack.c.bf16 %v163_v27, %v162_v26  ;;  %v164_v32 = vld [vmem:[#allocation5 + $0x40] sm:$0xff]  ;;  %v165_v33 = vld [vmem:[#allocation5 + $0x48] sm:$0xff] }
  0x30   :  { %397 = vmatpush3.bf16.msra.mxu0 %v396_v8  ;;  %v408_v34 = vpack.c.bf16 %v71_v30, %v70_v29  ;;  %v72_v35 = vld [vmem:[#allocation3 + $0x60] sm:$0xff]  ;;  %v73_v36 = vld [vmem:[#allocation3 + $0x68] sm:$0xff]  ;;  %v429_v37 = vpack.c.bf16 %v165_v33, %v164_v32  ;;  %v166_v38 = vld [vmem:[#allocation5 + $0x50] sm:$0xff] }
  0x31   :  { %398 = vmatprep.subr.bf16.mxu0 %v503_v1  ;;  %v167_v39 = vld [vmem:[#allocation5 + $0x58] sm:$0xff]  ;;  %v411_v40 = vpack.c.bf16 %v73_v36, %v72_v35  ;;  %v74_v41 = vld [vmem:[#allocation3 + $0x70] sm:$0xff]  ;;  %v168_v46 = vld [vmem:[#allocation5 + $0x60] sm:$0xff] }
  0x32   :  { %421 = vmatpush3.bf16.msra.mxu1 %v420_v19  ;;  %v75_v42 = vld [vmem:[#allocation3 + $0x78] sm:$0xff]  ;;  %v432_v43 = vpack.c.bf16 %v167_v39, %v166_v38  ;;  %v169_v47 = vld [vmem:[#allocation5 + $0x68] sm:$0xff]  ;;  %v170_v49 = vld [vmem:[#allocation5 + $0x70] sm:$0xff] }
  0x33   :  { %422 = vmatprep.subr.bf16.mxu1 %v503_v1  ;;  %v414_v44 = vpack.c.bf16 %v75_v42, %v74_v41  ;;  %v59_v45 = vld [vmem:[%s615_s0] sm:$0xff]  ;;  %v435_v48 = vpack.c.bf16 %v169_v47, %v168_v46  ;;  %v250_v63 = vld [vmem:[%s616_s1 + $0x8] sm:$0xff] }
  0x34   :  { %400 = vmatpush3.bf16.msra.mxu0 %v399_v15  ;;  %v171_v50 = vld [vmem:[#allocation5 + $0x78] sm:$0xff] }
  0x35   :  { %401 = vmatprep.subr.bf16.mxu0 %v503_v1  ;;  %v438_v51 = vpack.c.bf16 %v171_v50, %v170_v49  ;;  %v284_v52 = vld [vmem:[%s618_s3] ss:$0 sm:$0xff] }
  0x36   :  { %424 = vmatpush3.bf16.msra.mxu1 %v423_v25  ;;  %v154_v56 = vld [vmem:[%s616_s1] sm:$0xff] }
  0x37   :  { %425 = vmatprep.subr.bf16.mxu1 %v503_v1  ;;  %v285_v59 = vld [vmem:[%s620_s5] ss:$0 sm:$0xff] }
  0x38   :  { %403 = vmatpush3.bf16.msra.mxu0 %v402_v22  ;;  %v287_v4 = vld [vmem:[#allocation2] ss:$0 sm:$0xff] }
  0x39   :  { %404 = vmatprep.subr.bf16.mxu0 %v503_v1 }
  0x3a   :  { %427 = vmatpush3.bf16.msra.mxu1 %v426_v31 }
  0x3b   :  { %428 = vmatprep.subr.bf16.mxu1 %v503_v1 }
  0x3c   :  { %406 = vmatpush3.bf16.msra.mxu0 %v405_v28 }
  0x3d   :  { %407 = vmatprep.subr.bf16.mxu0 %v503_v1 }
  0x3e   :  { %430 = vmatpush3.bf16.msra.mxu1 %v429_v37 }
  0x3f   :  { %431 = vmatprep.subr.bf16.mxu1 %v503_v1 }
  0x40   :  { %409 = vmatpush3.bf16.msra.mxu0 %v408_v34 }
  0x41   :  { %410 = vmatprep.subr.bf16.mxu0 %v503_v1 }
  0x42   :  { %433 = vmatpush3.bf16.msra.mxu1 %v432_v43 }
  0x43   :  { %434 = vmatprep.subr.bf16.mxu1 %v503_v1 }
  0x44   :  { %412 = vmatpush3.bf16.msra.mxu0 %v411_v40 }
  0x45   :  { %413 = vmatprep.subr.bf16.mxu0 %v503_v1 }
  0x46   :  { %436 = vmatpush3.bf16.msra.mxu1 %v435_v48 }
  0x47   :  { %437 = vmatprep.subr.bf16.mxu1 %v503_v1  ;;  %v286_v1 = vld [vmem:[%s621_s6] ss:$0 sm:$0xff] }
  0x48   :  { %415 = vmatpush3.bf16.msra.mxu0 %v414_v44 }
  0x4a   :  { %439 = vmatpush3.bf16.msra.mxu1 %v438_v51 }
  0x4b   :  { %355 = vmatmul.mubr.f32.vlgmr.msra.gmra.mrb[0].mxu0 %v59_v45 }
 0x11e   :  { %v149_v53 = vpop.f32.mrb[0].mxu0 }
 0x11f   :  { %v150_v54 = vadd.f32 %v284_v52, %v149_v53  ;;  %v356_v55 = vpop.f32.mrb[1].mxu0 }
 0x121   :  { %v153_v57 = vmax.f32 %v150_v54, 0.0 }
 0x123   :  { %v155_v58 = vmul.f32 %v154_v56, %v153_v57 }
 0x125   :  { %390 = vmatmul.mubr.f32.vlgmr.msra.gmra.mrb[0].mxu1 %v155_v58 }
 0x1f8   :  { %v245_v60 = vpop.f32.mrb[0].mxu1 }
 0x1f9   :  { %v246_v61 = vadd.f32 %v285_v59, %v245_v60  ;;  %v391_v62 = vpop.f32.mrb[1].mxu1 }
 0x1fb   :  { %v249_v0 = vmax.f32 %v246_v61, 0.0 }
 0x1fd   :  { %v251_v2 = vmul.f32 %v250_v63, %v249_v0 }
 0x1ff   :  { %v259_v3 = vmul.f32 %v286_v1, %v251_v2 }
 0x201   :  { %260 = vadd.xlane.f32.xlu0 %v259_v3 }
 0x28e   :  { %v261_v5 = vpop.xlane.xlu0 %260 }
 0x28f   :  { %v269_v6 = vadd.f32 %v287_v4, %v261_v5 }
 0x291   :  { %v270_v7 = vsub.f32 0.0, %v269_v6 }
 0x293   :  { %v271_v8 = vmul.f32 1.442695, %v270_v7 }
 0x295   :  { %447 = vpow2.f32 %v271_v8 }
 0x29f   :  { %v448_v9 = vpop.eup %447 }
 0x2a0   :  { %v273_v10 = vadd.f32 1.0, %v448_v9 }
 0x2a2   :  { %449 = vrcp.f32 %v273_v10 }
 0x2ac   :  { %v450_v11 = vpop.eup %449 }
 0x2ad   :  { %277 = vst.msk [vmem:[%s623_s8] sm:$0xff] %vm276_vm1, %v450_v11 }
 0x2ae   :  { %282 = vsyncpa [#allocation4], 1 }
 0x2af   :  { %283 = vsyncpa [#allocation6], 1 }

</bundles_post_ra>
